<compile_context>
chip_gen: v7x
topology: tpu7x:2x2x1
jax: 0.10.0
libtpu: 0.0.40
codegen_flags: <defaults>
</compile_context>

<pallas_src>
from functools import partial

import jax
import jax.numpy as jnp
import numpy as np
from jax import lax
from jax.experimental import pallas as pl
from jax.experimental.pallas import tpu as pltpu


# ----------------------------------------------------------------------------- kernel

def _basic_blocks_kernel(x_ref, w0_ref, b0_ref,
                         w1_ref, s1_ref, t1_ref,
                         w2_ref, s2_ref, t2_ref,
                         o_ref, *, H):
    """All activations live in a lane-dense (R, W*C) layout (R = images_per_step * H).

    x_ref        : (R, W*Cin)          input slab
    w0_ref       : (W*Cin, W*Cout)     block-diagonal 1x1 conv weight
    b0_ref       : (1, W*Cout)         1x1 conv bias, tiled per spatial column
    w{1,2}_ref   : (3, W*Cout, W*Cout) fused 3x3 conv weight (kx taps folded in, one block per ky)
    s/t refs     : (1, W*Cout)         folded BN scale / (conv bias + BN) shift, tiled
    o_ref        : (R, W*Cout)         output slab
    """
    f32 = jnp.float32
    R, WC = o_ref.shape

    # Boundary masks for the ky = 0 / ky = 2 row taps (computed once, shared by both blocks).
    row = lax.broadcasted_iota(jnp.int32, (R, WC), 0)
    is_top = (row % H) == 0          # row above belongs to a different image -> zero tap
    is_bot = (row % H) == H - 1      # row below belongs to a different image -> zero tap

    # 1x1 conv: one matmul against the block-diagonal weight (per-pixel channel mix).
    x0 = jnp.dot(x_ref[...], w0_ref[...], preferred_element_type=f32) + b0_ref[...]

    def conv3x3_bn_relu(x, w_ref, s_ref, t_ref):
        # ky = 1 (middle) tap first: it does not depend on the shifted slabs, so the MXU
        # starts immediately while the XLU/VPU produce x_up / x_dn.
        acc = jnp.dot(x, w_ref[1], preferred_element_type=f32)
        # ky = 0 / ky = 2 taps: sublane rolls (XLU slot) + boundary masks (VPU slot),
        # no MXU shift matmuls and no 3x-wide activation copy in VMEM.
        x_up = jnp.where(is_top, 0.0, pltpu.roll(x, 1, axis=0))        # row r-1 within image
        x_dn = jnp.where(is_bot, 0.0, pltpu.roll(x, R - 1, axis=0))    # row r+1 within image
        acc = acc + jnp.dot(x_up, w_ref[0], preferred_element_type=f32)
        acc = acc + jnp.dot(x_dn, w_ref[2], preferred_element_type=f32)
        # fused (conv bias + BatchNorm) scale/shift, then ReLU — full-lane-width VPU work.
        return jnp.maximum(acc * s_ref[...] + t_ref[...], 0.0)

    c1 = conv3x3_bn_relu(x0, w1_ref, s1_ref, t1_ref)
    c2 = conv3x3_bn_relu(c1, w2_ref, s2_ref, t2_ref)

    o_ref[...] = (c2 + x0).astype(o_ref.dtype)


# ----------------------------------------------------------------------------- wrapper

def basic_blocks_forward(x_nhwc, folded_params, images_per_block=None):
    """x_nhwc: (N, H, W, Cin) float32 -> (N, H, W, Cout)."""
    N, H, W, Cin = x_nhwc.shape
    w0_bd, b0_row, w1_full, s1_row, t1_row, w2_full, s2_row, t2_row = folded_params
    WCin = W * Cin
    WCout = b0_row.shape[1]
    Cout = WCout // W

    if images_per_block is None:
        # Prefer >= 2 grid steps (DMA/compute overlap, v7x megacore sharding) while growing
        # R = nb*H toward ~256 rows per step on larger batches to fill the MXU M dimension.
        nb = min(max(1, N // 2), max(1, 256 // H))
        while N % nb:
            nb -= 1
    else:
        nb = images_per_block
    assert N % nb == 0, "images_per_block must divide the batch"
    R = nb * H                      # rows handled per grid step (multiple of H, H mult. of 8 here)

    x2d = x_nhwc.reshape(N * H, WCin)       # lane-dense slab, pure reshape (no transpose)

    def row_map(i):
        return (i, 0)

    def full2_map(i):
        return (0, 0)

    def full3_map(i):
        return (0, 0, 0)

    out2d = pl.pallas_call(
        partial(_basic_blocks_kernel, H=H),
        out_shape=jax.ShapeDtypeStruct((N * H, WCout), x_nhwc.dtype),
        grid_spec=pltpu.PrefetchScalarGridSpec(
            num_scalar_prefetch=0,
            grid=(N // nb,),
            in_specs=[
                pl.BlockSpec((R, WCin), row_map),
                pl.BlockSpec(w0_bd.shape, full2_map),
                pl.BlockSpec(b0_row.shape, full2_map),
                pl.BlockSpec(w1_full.shape, full3_map),
                pl.BlockSpec(s1_row.shape, full2_map),
                pl.BlockSpec(t1_row.shape, full2_map),
                pl.BlockSpec(w2_full.shape, full3_map),
                pl.BlockSpec(s2_row.shape, full2_map),
                pl.BlockSpec(t2_row.shape, full2_map),
            ],
            out_specs=pl.BlockSpec((R, WCout), row_map),
        ),
        compiler_params=pltpu.CompilerParams(
            dimension_semantics=("parallel",)),   # independent batch chunks (v7x 2 TCs)
    )(x2d, w0_bd, b0_row, w1_full, s1_row, t1_row, w2_full, s2_row, t2_row)

    return out2d.reshape(N, H, W, Cout)


# ----------------------------------------------------------------------------- params

def init_params(key, cin, cout):
    """Deterministic init mimicking PyTorch defaults (uniform +-1/sqrt(fan_in))."""
    ks = jax.random.split(key, 6)

    def uni(k, shape, fan_in):
        bnd = 1.0 / np.sqrt(fan_in)
        return jax.random.uniform(k, shape, jnp.float32, -bnd, bnd)

    w0 = uni(ks[0], (cin, cout), cin)               # 1x1 conv (HWIO squeezed to IO)
    b0 = uni(ks[1], (cout,), cin)
    w1 = uni(ks[2], (3, 3, cout, cout), cout * 9)   # HWIO
    b1 = uni(ks[3], (cout,), cout * 9)
    w2 = uni(ks[4], (3, 3, cout, cout), cout * 9)
    b2 = uni(ks[5], (cout,), cout * 9)

    # BatchNorm2d default params / running stats (eval mode)
    eps = 1e-5
    gamma = jnp.ones((cout,), jnp.float32)
    beta = jnp.zeros((cout,), jnp.float32)
    mean = jnp.zeros((cout,), jnp.float32)
    var = jnp.ones((cout,), jnp.float32)
    return (w0, b0, w1, b1, w2, b2, gamma, beta, mean, var, eps)


def fold_params(raw_params, W):
    """Fold weights into the lane-dense (W-folded) matmul operands the kernel consumes."""
    w0, b0, w1, b1, w2, b2, gamma, beta, mean, var, eps = raw_params
    cin, cout = w0.shape
    scale = gamma / jnp.sqrt(var + eps)

    # 1x1 conv as a block-diagonal (W*cin, W*cout) matmul weight.
    w0_bd = jnp.kron(jnp.eye(W, dtype=jnp.float32), w0)
    b0_row = jnp.tile(b0, W)[None, :]               # (1, W*cout)

    def fuse3x3(w3):
        # (3, 3, C, C) HWIO -> (3, W*C, W*C).  For each ky, the three kx taps are folded into
        # a block-tridiagonal matrix over the W spatial columns (SAME padding -> the
        # out-of-range kx blocks are simply absent, i.e. zero).
        blocks = []
        for ky in range(3):
            blk = jnp.zeros((W * cout, W * cout), jnp.float32)
            for dx in (-1, 0, 1):
                blk = blk + jnp.kron(jnp.eye(W, k=-dx, dtype=jnp.float32), w3[ky, dx + 1])
            blocks.append(blk)
        return jnp.stack(blocks, axis=0)

    def bn_rows(b):
        shift = (b - mean) * scale + beta           # conv bias folded into BN shift
        return jnp.tile(scale, W)[None, :], jnp.tile(shift, W)[None, :]

    s1_row, t1_row = bn_rows(b1)
    s2_row, t2_row = bn_rows(b2)
    return (w0_bd, b0_row, fuse3x3(w1), s1_row, t1_row, fuse3x3(w2), s2_row, t2_row)


# ----------------------------------------------------------------------------- reference

def reference_forward(x_nhwc, raw_params):
    w0, b0, w1, b1, w2, b2, gamma, beta, mean, var, eps = raw_params
    dn = ("NHWC", "HWIO", "NHWC")
    cin, cout = w0.shape

    x0 = lax.conv_general_dilated(x_nhwc, w0.reshape(1, 1, cin, cout),
                                  (1, 1), "SAME", dimension_numbers=dn) + b0

    def block(inp, w, b):
        y = lax.conv_general_dilated(inp, w, (1, 1), "SAME", dimension_numbers=dn) + b
        y = (y - mean) / jnp.sqrt(var + eps) * gamma + beta
        return jnp.maximum(y, 0.0)

    c1 = block(x0, w1, b1)
    c2 = block(c1, w2, b2)
    return c2 + x0


# ----------------------------------------------------------------------------- main

if __name__ == "__main__":
    N, Cin, Cout, H, W = 2, 4, 8, 16, 16

    key = jax.random.PRNGKey(0)
    kx, kp = jax.random.split(key)

    # PyTorch-style NCHW input, transposed to the kernel's NHWC layout.
    x_nchw = jax.random.normal(kx, (N, Cin, H, W), jnp.float32)
    x_nhwc = jnp.transpose(x_nchw, (0, 2, 3, 1))

    raw_params = init_params(kp, Cin, Cout)
    kernel_params = fold_params(raw_params, W)

    out = jax.block_until_ready(basic_blocks_forward(x_nhwc, kernel_params))
    ref = jax.block_until_ready(reference_forward(x_nhwc, raw_params))

    assert out.shape == (N, H, W, Cout), out.shape
    np.testing.assert_allclose(np.asarray(out), np.asarray(ref), atol=1e-4, rtol=1e-4)

    print("KERNEL_OK")
</pallas_src>

<mosaic_0001>
module attributes {stable_mosaic.version = 11 : i64} {
  func.func @_basic_blocks_kernel(%arg0: i32, %arg1: memref<16x64xf32, #tpu.memory_space<vmem>>, %arg2: memref<64x128xf32, #tpu.memory_space<vmem>>, %arg3: memref<1x128xf32, #tpu.memory_space<vmem>>, %arg4: memref<3x128x128xf32, #tpu.memory_space<vmem>>, %arg5: memref<1x128xf32, #tpu.memory_space<vmem>>, %arg6: memref<1x128xf32, #tpu.memory_space<vmem>>, %arg7: memref<3x128x128xf32, #tpu.memory_space<vmem>>, %arg8: memref<1x128xf32, #tpu.memory_space<vmem>>, %arg9: memref<1x128xf32, #tpu.memory_space<vmem>>, %arg10: memref<16x128xf32, #tpu.memory_space<vmem>>) attributes {dimension_semantics = [#tpu.dimension_semantics<parallel>], iteration_bounds = array<i64: 2>, scalar_prefetch = 0 : i64, scratch_operands = 0 : i64, tpu.core_type = #tpu.core_type<tc>, window_params = [{transform_indices = @transform_0, window_bounds = array<i64: 16, 64>}, {pipeline_mode = #tpu.pipeline_mode<synchronous>, transform_indices = @transform_1, window_bounds = array<i64: 64, 128>}, {pipeline_mode = #tpu.pipeline_mode<synchronous>, transform_indices = @transform_2, window_bounds = array<i64: 1, 128>}, {pipeline_mode = #tpu.pipeline_mode<synchronous>, transform_indices = @transform_3, window_bounds = array<i64: 3, 128, 128>}, {pipeline_mode = #tpu.pipeline_mode<synchronous>, transform_indices = @transform_4, window_bounds = array<i64: 1, 128>}, {pipeline_mode = #tpu.pipeline_mode<synchronous>, transform_indices = @transform_5, window_bounds = array<i64: 1, 128>}, {pipeline_mode = #tpu.pipeline_mode<synchronous>, transform_indices = @transform_6, window_bounds = array<i64: 3, 128, 128>}, {pipeline_mode = #tpu.pipeline_mode<synchronous>, transform_indices = @transform_7, window_bounds = array<i64: 1, 128>}, {pipeline_mode = #tpu.pipeline_mode<synchronous>, transform_indices = @transform_8, window_bounds = array<i64: 1, 128>}, {transform_indices = @transform_9, window_bounds = array<i64: 16, 128>}]} {
    %0 = tpu.iota {dimensions = array<i32: 0>} : vector<16x128xi32>
    %c16_i32 = arith.constant 16 : i32
    %c0_i32 = arith.constant 0 : i32
    %1 = arith.cmpi eq, %c16_i32, %c0_i32 : i32
    %c1_i32 = arith.constant 1 : i32
    %2 = arith.select %1, %c1_i32, %c16_i32 : i32
    %3 = vector.broadcast %2 : i32 to vector<16x128xi32>
    %4 = arith.remsi %0, %3 : vector<16x128xi32>
    %c0_i32_0 = arith.constant 0 : i32
    %5 = vector.broadcast %c0_i32_0 : i32 to vector<16x128xi32>
    %6 = arith.cmpi ne, %4, %5 : vector<16x128xi32>
    %c0_i32_1 = arith.constant 0 : i32
    %7 = vector.broadcast %c0_i32_1 : i32 to vector<16x128xi32>
    %8 = arith.cmpi slt, %4, %7 : vector<16x128xi32>
    %c0_i32_2 = arith.constant 0 : i32
    %9 = arith.cmpi slt, %2, %c0_i32_2 : i32
    %10 = vector.broadcast %9 : i1 to vector<16x128xi1>
    %11 = vector.broadcast %10 : vector<16x128xi1> to vector<16x128xi1>
    %12 = arith.xori %8, %11 : vector<16x128xi1>
    %13 = arith.andi %12, %6 : vector<16x128xi1>
    %14 = vector.broadcast %2 : i32 to vector<16x128xi32>
    %15 = arith.addi %4, %14 : vector<16x128xi32>
    %16 = arith.select %13, %15, %4 : vector<16x128xi1>, vector<16x128xi32>
    %c0_i32_3 = arith.constant 0 : i32
    %17 = vector.broadcast %c0_i32_3 : i32 to vector<16x128xi32>
    %18 = arith.cmpi eq, %16, %17 : vector<16x128xi32>
    %c16_i32_4 = arith.constant 16 : i32
    %c0_i32_5 = arith.constant 0 : i32
    %19 = arith.cmpi eq, %c16_i32_4, %c0_i32_5 : i32
    %c1_i32_6 = arith.constant 1 : i32
    %20 = arith.select %19, %c1_i32_6, %c16_i32_4 : i32
    %21 = vector.broadcast %20 : i32 to vector<16x128xi32>
    %22 = arith.remsi %0, %21 : vector<16x128xi32>
    %c0_i32_7 = arith.constant 0 : i32
    %23 = vector.broadcast %c0_i32_7 : i32 to vector<16x128xi32>
    %24 = arith.cmpi ne, %22, %23 : vector<16x128xi32>
    %c0_i32_8 = arith.constant 0 : i32
    %25 = vector.broadcast %c0_i32_8 : i32 to vector<16x128xi32>
    %26 = arith.cmpi slt, %22, %25 : vector<16x128xi32>
    %c0_i32_9 = arith.constant 0 : i32
    %27 = arith.cmpi slt, %20, %c0_i32_9 : i32
    %28 = vector.broadcast %27 : i1 to vector<16x128xi1>
    %29 = vector.broadcast %28 : vector<16x128xi1> to vector<16x128xi1>
    %30 = arith.xori %26, %29 : vector<16x128xi1>
    %31 = arith.andi %30, %24 : vector<16x128xi1>
    %32 = vector.broadcast %20 : i32 to vector<16x128xi32>
    %33 = arith.addi %22, %32 : vector<16x128xi32>
    %34 = arith.select %31, %33, %22 : vector<16x128xi1>, vector<16x128xi32>
    %c15_i32 = arith.constant 15 : i32
    %35 = vector.broadcast %c15_i32 : i32 to vector<16x128xi32>
    %36 = arith.cmpi eq, %34, %35 : vector<16x128xi32>
    %c0 = arith.constant 0 : index
    %c0_10 = arith.constant 0 : index
    %37 = vector.load %arg1[%c0, %c0_10] : memref<16x64xf32, #tpu.memory_space<vmem>>, vector<16x64xf32>
    %c0_11 = arith.constant 0 : index
    %c0_12 = arith.constant 0 : index
    %38 = vector.load %arg2[%c0_11, %c0_12] : memref<64x128xf32, #tpu.memory_space<vmem>>, vector<64x128xf32>
    %cst = arith.constant dense<0.000000e+00> : vector<16x128xf32>
    %39 = tpu.matmul %37, %38, %cst {dimension_numbers = #tpu.dot_dimension_numbers<[1], [0], [0], [1], [0, 0, 1, 1], [], []>} : vector<16x64xf32>, vector<64x128xf32>, vector<16x128xf32> -> vector<16x128xf32>
    %c0_13 = arith.constant 0 : index
    %c0_14 = arith.constant 0 : index
    %40 = vector.load %arg3[%c0_13, %c0_14] : memref<1x128xf32, #tpu.memory_space<vmem>>, vector<1x128xf32>
    %41 = vector.broadcast %40 : vector<1x128xf32> to vector<16x128xf32>
    %42 = arith.addf %39, %41 : vector<16x128xf32>
    %c1 = arith.constant 1 : index
    %c0_15 = arith.constant 0 : index
    %c0_16 = arith.constant 0 : index
    %43 = vector.load %arg4[%c1, %c0_15, %c0_16] : memref<3x128x128xf32, #tpu.memory_space<vmem>>, vector<1x128x128xf32>
    %44 = vector.shape_cast %43 : vector<1x128x128xf32> to vector<128x128xf32>
    %cst_17 = arith.constant dense<0.000000e+00> : vector<16x128xf32>
    %45 = tpu.matmul %42, %44, %cst_17 {dimension_numbers = #tpu.dot_dimension_numbers<[1], [0], [0], [1], [0, 0, 1, 1], [], []>} : vector<16x128xf32>, vector<128x128xf32>, vector<16x128xf32> -> vector<16x128xf32>
    %c1_i32_18 = arith.constant 1 : i32
    %46 = tpu.dynamic_rotate %42 by %c1_i32_18 dim 0 : vector<16x128xf32>, i32 -> vector<16x128xf32>
    %cst_19 = arith.constant 0.000000e+00 : f32
    %47 = vector.broadcast %cst_19 : f32 to vector<16x128xf32>
    %48 = arith.select %18, %47, %46 : vector<16x128xi1>, vector<16x128xf32>
    %c15_i32_20 = arith.constant 15 : i32
    %49 = tpu.dynamic_rotate %42 by %c15_i32_20 dim 0 : vector<16x128xf32>, i32 -> vector<16x128xf32>
    %cst_21 = arith.constant 0.000000e+00 : f32
    %50 = vector.broadcast %cst_21 : f32 to vector<16x128xf32>
    %51 = arith.select %36, %50, %49 : vector<16x128xi1>, vector<16x128xf32>
    %c0_22 = arith.constant 0 : index
    %c0_23 = arith.constant 0 : index
    %c0_24 = arith.constant 0 : index
    %52 = vector.load %arg4[%c0_22, %c0_23, %c0_24] : memref<3x128x128xf32, #tpu.memory_space<vmem>>, vector<1x128x128xf32>
    %53 = vector.shape_cast %52 : vector<1x128x128xf32> to vector<128x128xf32>
    %cst_25 = arith.constant dense<0.000000e+00> : vector<16x128xf32>
    %54 = tpu.matmul %48, %53, %cst_25 {dimension_numbers = #tpu.dot_dimension_numbers<[1], [0], [0], [1], [0, 0, 1, 1], [], []>} : vector<16x128xf32>, vector<128x128xf32>, vector<16x128xf32> -> vector<16x128xf32>
    %55 = arith.addf %45, %54 : vector<16x128xf32>
    %c2 = arith.constant 2 : index
    %c0_26 = arith.constant 0 : index
    %c0_27 = arith.constant 0 : index
    %56 = vector.load %arg4[%c2, %c0_26, %c0_27] : memref<3x128x128xf32, #tpu.memory_space<vmem>>, vector<1x128x128xf32>
    %57 = vector.shape_cast %56 : vector<1x128x128xf32> to vector<128x128xf32>
    %cst_28 = arith.constant dense<0.000000e+00> : vector<16x128xf32>
    %58 = tpu.matmul %51, %57, %cst_28 {dimension_numbers = #tpu.dot_dimension_numbers<[1], [0], [0], [1], [0, 0, 1, 1], [], []>} : vector<16x128xf32>, vector<128x128xf32>, vector<16x128xf32> -> vector<16x128xf32>
    %59 = arith.addf %55, %58 : vector<16x128xf32>
    %c0_29 = arith.constant 0 : index
    %c0_30 = arith.constant 0 : index
    %60 = vector.load %arg5[%c0_29, %c0_30] : memref<1x128xf32, #tpu.memory_space<vmem>>, vector<1x128xf32>
    %61 = vector.broadcast %60 : vector<1x128xf32> to vector<16x128xf32>
    %62 = arith.mulf %59, %61 : vector<16x128xf32>
    %c0_31 = arith.constant 0 : index
    %c0_32 = arith.constant 0 : index
    %63 = vector.load %arg6[%c0_31, %c0_32] : memref<1x128xf32, #tpu.memory_space<vmem>>, vector<1x128xf32>
    %64 = vector.broadcast %63 : vector<1x128xf32> to vector<16x128xf32>
    %65 = arith.addf %62, %64 : vector<16x128xf32>
    %cst_33 = arith.constant 0.000000e+00 : f32
    %66 = vector.broadcast %cst_33 : f32 to vector<16x128xf32>
    %67 = arith.maximumf %65, %66 : vector<16x128xf32>
    %c1_34 = arith.constant 1 : index
    %c0_35 = arith.constant 0 : index
    %c0_36 = arith.constant 0 : index
    %68 = vector.load %arg7[%c1_34, %c0_35, %c0_36] : memref<3x128x128xf32, #tpu.memory_space<vmem>>, vector<1x128x128xf32>
    %69 = vector.shape_cast %68 : vector<1x128x128xf32> to vector<128x128xf32>
    %cst_37 = arith.constant dense<0.000000e+00> : vector<16x128xf32>
    %70 = tpu.matmul %67, %69, %cst_37 {dimension_numbers = #tpu.dot_dimension_numbers<[1], [0], [0], [1], [0, 0, 1, 1], [], []>} : vector<16x128xf32>, vector<128x128xf32>, vector<16x128xf32> -> vector<16x128xf32>
    %c1_i32_38 = arith.constant 1 : i32
    %71 = tpu.dynamic_rotate %67 by %c1_i32_38 dim 0 : vector<16x128xf32>, i32 -> vector<16x128xf32>
    %cst_39 = arith.constant 0.000000e+00 : f32
    %72 = vector.broadcast %cst_39 : f32 to vector<16x128xf32>
    %73 = arith.select %18, %72, %71 : vector<16x128xi1>, vector<16x128xf32>
    %c15_i32_40 = arith.constant 15 : i32
    %74 = tpu.dynamic_rotate %67 by %c15_i32_40 dim 0 : vector<16x128xf32>, i32 -> vector<16x128xf32>
    %cst_41 = arith.constant 0.000000e+00 : f32
    %75 = vector.broadcast %cst_41 : f32 to vector<16x128xf32>
    %76 = arith.select %36, %75, %74 : vector<16x128xi1>, vector<16x128xf32>
    %c0_42 = arith.constant 0 : index
    %c0_43 = arith.constant 0 : index
    %c0_44 = arith.constant 0 : index
    %77 = vector.load %arg7[%c0_42, %c0_43, %c0_44] : memref<3x128x128xf32, #tpu.memory_space<vmem>>, vector<1x128x128xf32>
    %78 = vector.shape_cast %77 : vector<1x128x128xf32> to vector<128x128xf32>
    %cst_45 = arith.constant dense<0.000000e+00> : vector<16x128xf32>
    %79 = tpu.matmul %73, %78, %cst_45 {dimension_numbers = #tpu.dot_dimension_numbers<[1], [0], [0], [1], [0, 0, 1, 1], [], []>} : vector<16x128xf32>, vector<128x128xf32>, vector<16x128xf32> -> vector<16x128xf32>
    %80 = arith.addf %70, %79 : vector<16x128xf32>
    %c2_46 = arith.constant 2 : index
    %c0_47 = arith.constant 0 : index
    %c0_48 = arith.constant 0 : index
    %81 = vector.load %arg7[%c2_46, %c0_47, %c0_48] : memref<3x128x128xf32, #tpu.memory_space<vmem>>, vector<1x128x128xf32>
    %82 = vector.shape_cast %81 : vector<1x128x128xf32> to vector<128x128xf32>
    %cst_49 = arith.constant dense<0.000000e+00> : vector<16x128xf32>
    %83 = tpu.matmul %76, %82, %cst_49 {dimension_numbers = #tpu.dot_dimension_numbers<[1], [0], [0], [1], [0, 0, 1, 1], [], []>} : vector<16x128xf32>, vector<128x128xf32>, vector<16x128xf32> -> vector<16x128xf32>
    %84 = arith.addf %80, %83 : vector<16x128xf32>
    %c0_50 = arith.constant 0 : index
    %c0_51 = arith.constant 0 : index
    %85 = vector.load %arg8[%c0_50, %c0_51] : memref<1x128xf32, #tpu.memory_space<vmem>>, vector<1x128xf32>
    %86 = vector.broadcast %85 : vector<1x128xf32> to vector<16x128xf32>
    %87 = arith.mulf %84, %86 : vector<16x128xf32>
    %c0_52 = arith.constant 0 : index
    %c0_53 = arith.constant 0 : index
    %88 = vector.load %arg9[%c0_52, %c0_53] : memref<1x128xf32, #tpu.memory_space<vmem>>, vector<1x128xf32>
    %89 = vector.broadcast %88 : vector<1x128xf32> to vector<16x128xf32>
    %90 = arith.addf %87, %89 : vector<16x128xf32>
    %cst_54 = arith.constant 0.000000e+00 : f32
    %91 = vector.broadcast %cst_54 : f32 to vector<16x128xf32>
    %92 = arith.maximumf %90, %91 : vector<16x128xf32>
    %93 = arith.addf %92, %42 : vector<16x128xf32>
    %c0_55 = arith.constant 0 : index
    %c0_56 = arith.constant 0 : index
    %94 = vector.load %arg10[%c0_55, %c0_56] : memref<16x128xf32, #tpu.memory_space<vmem>>, vector<16x128xf32>
    tpu.vector_store %arg10[%c0_55, %c0_56], %93 {strides = array<i32>} : memref<16x128xf32, #tpu.memory_space<vmem>>, vector<16x128xf32>,
    return
  }
  func.func @transform_0(%arg0: i32) -> (i32, i32) {
    %c0_i32 = arith.constant 0 : i32
    %c0_i32_0 = arith.constant 0 : i32
    return %arg0, %c0_i32 : i32, i32
  }
  func.func @transform_1(%arg0: i32) -> (i32, i32) {
    %c0_i32 = arith.constant 0 : i32
    %c0_i32_0 = arith.constant 0 : i32
    %c0_i32_1 = arith.constant 0 : i32
    return %c0_i32, %c0_i32_0 : i32, i32
  }
  func.func @transform_2(%arg0: i32) -> (i32, i32) {
    %c0_i32 = arith.constant 0 : i32
    %c0_i32_0 = arith.constant 0 : i32
    %c0_i32_1 = arith.constant 0 : i32
    return %c0_i32, %c0_i32_0 : i32, i32
  }
  func.func @transform_3(%arg0: i32) -> (i32, i32, i32) {
    %c0_i32 = arith.constant 0 : i32
    %c0_i32_0 = arith.constant 0 : i32
    %c0_i32_1 = arith.constant 0 : i32
    %c0_i32_2 = arith.constant 0 : i32
    return %c0_i32, %c0_i32_0, %c0_i32_1 : i32, i32, i32
  }
  func.func @transform_4(%arg0: i32) -> (i32, i32) {
    %c0_i32 = arith.constant 0 : i32
    %c0_i32_0 = arith.constant 0 : i32
    %c0_i32_1 = arith.constant 0 : i32
    return %c0_i32, %c0_i32_0 : i32, i32
  }
  func.func @transform_5(%arg0: i32) -> (i32, i32) {
    %c0_i32 = arith.constant 0 : i32
    %c0_i32_0 = arith.constant 0 : i32
    %c0_i32_1 = arith.constant 0 : i32
    return %c0_i32, %c0_i32_0 : i32, i32
  }
  func.func @transform_6(%arg0: i32) -> (i32, i32, i32) {
    %c0_i32 = arith.constant 0 : i32
    %c0_i32_0 = arith.constant 0 : i32
    %c0_i32_1 = arith.constant 0 : i32
    %c0_i32_2 = arith.constant 0 : i32
    return %c0_i32, %c0_i32_0, %c0_i32_1 : i32, i32, i32
  }
  func.func @transform_7(%arg0: i32) -> (i32, i32) {
    %c0_i32 = arith.constant 0 : i32
    %c0_i32_0 = arith.constant 0 : i32
    %c0_i32_1 = arith.constant 0 : i32
    return %c0_i32, %c0_i32_0 : i32, i32
  }
  func.func @transform_8(%arg0: i32) -> (i32, i32) {
    %c0_i32 = arith.constant 0 : i32
    %c0_i32_0 = arith.constant 0 : i32
    %c0_i32_1 = arith.constant 0 : i32
    return %c0_i32, %c0_i32_0 : i32, i32
  }
  func.func @transform_9(%arg0: i32) -> (i32, i32) {
    %c0_i32 = arith.constant 0 : i32
    %c0_i32_0 = arith.constant 0 : i32
    return %arg0, %c0_i32 : i32, i32
  }
}

</mosaic_0001>

<bundles_post_ra>
// kernel: tpu_custom_call.1
= control target key start
LH: loop header
LB: loop body
LE: loop exit
PB: predicated region body
PF: predicated region fallthrough
CT: control target
= control target key end

     0   :  { %s2548_s0 = inlined_call_operand.hbm [shape: f32[32,64], index: 0, kind: input, shape index: {}]   ;;  %s2549_s1 = inlined_call_operand.hbm [shape: f32[64,128], index: 1, kind: input, shape index: {}]   ;;  %s2550_s2 = inlined_call_operand.vmem [shape: f32[1,128], index: 2, kind: input, shape index: {}]   ;;  %s2551_s3 = inlined_call_operand.hbm [shape: f32[3,128,128], index: 3, kind: input, shape index: {}]   ;;  %s2552_s4 = inlined_call_operand.vmem [shape: f32[1,128], index: 4, kind: input, shape index: {}]   ;;  %s2553_s5 = inlined_call_operand.vmem [shape: f32[1,128], index: 5, kind: input, shape index: {}]   ;;  %s2554_s6 = inlined_call_operand.hbm [shape: f32[3,128,128], index: 6, kind: input, shape index: {}]   ;;  %s2555_s7 = inlined_call_operand.vmem [shape: f32[1,128], index: 7, kind: input, shape index: {}]   ;;  %s2556_s8 = inlined_call_operand.vmem [shape: f32[1,128], index: 8, kind: input, shape index: {}]   ;;  %s2557_s9 = inlined_call_operand.hbm [shape: f32[32,128], index: 9, kind: output, shape index: {}]  }
   0x1   :  { %2564 = sst [smem:[#allocation17_spill]] %s2557_s9 }
   0x2   :  { %14 = vsyncpa [#allocation3], 0 }
   0x3   :  { %16 = vsyncpa [#allocation3 + $0x1], 0 }
   0x4   :  { %17 = vsyncpa [#allocation6], 0 }
   0x5   :  { %18 = vsyncpa [#allocation9], 0 }
   0x6   :  { %19 = vsyncpa [#allocation4], 0 }
   0x7   :  { %21 = vsyncpa [#allocation4 + $0x1], 0  ;;  %s2199_s30 = smov 0   ;;  %s2201_s10 = smov 0  }
   0x8   :  { %s2203_s11 = smov 0   ;;  %s2205_s12 = smov 0  }
   0x9 LB: > { %2565 = sst [smem:[#allocation15_spill]] %s2126_s30  ;;  %s2220_s13 = sadd.s32 4294967295, %s2138_s12   ;;  %s2138_s12 = sphi %s2205_s12, %s2593_s12   ;;  %s2134_s11 = sphi %s2203_s11, %s2592_s11   ;;  %s2130_s10 = sphi %s2201_s10, %s2591_s10   ;;  %s2126_s30 = sphi %s2199_s30, %s2590_s30  }
   0xa   : > { %s1267_s14 = sadd.s32 4294967294, %s2138_s12   ;;  %p47_p0 = scmp.ne.s32.totalorder %s2130_s10, %s2126_s30 }
   0xb   : > { %p2558_p1 = scmp.eq.s32.totalorder %s2220_s13, 0  ;;  %p245_p3 = scmp.eq.s32.totalorder %s1267_s14, 1 }
   0xc   : > { %p1268_p5 = scmp.ge.s32.totalorder %s2138_s12, 1  ;;  %p252_p7 = scmp.lt.s32.totalorder %s2138_s12, 3 }
   0xd   : > { %p2229_p4 = por %p2558_p1, %p47_p0  ;;  %p2234_p6 = por %p245_p3, %p47_p0 }
   0xe   : > { %p2239_p8 = pnand %p1268_p5, %p252_p7  ;;  %s2140_s18 = smov [#allocation5]  }
   0xf   : > { %s2566_s15 = scalar_select %p2229_p4, 1, 0 }
  0x10   : > { %s2567_s16 = scalar_select %p2234_p6, 1, 0 }
  0x11   : > { %s2569_s17 = scalar_select %p2239_p8, 1, 0 }
  0x12   : > { %2568 = sst [smem:[#allocation16_spill]] %s2567_s16  ;;  %s264_s19 = sshll.u32 %s2140_s18, 4  ;;  %s2243_s19 = int_to_ptr.vmem [resolvable:$true] %s264_s19 }
  0x13   : > { %p1885_p9 = pneg %p2239_p8  ;;  %s2141_s21 = smov [#allocation7]  }
  0x14   : > { %s280_s22 = sshll.u32 %s2141_s21, 4  ;;  %s2142_s23 = smov [#allocation8]   ;;  %s2254_s22 = int_to_ptr.vmem [resolvable:$true] %s280_s22 }
  0x15   : > { %p2250_p11 = pnand %p1885_p9, %p2558_p1  ;;  %s2256_s24 = sshll.u32 %s2142_s23, 4  ;;  %s300_s24 = int_to_ptr.vmem [resolvable:$true] %s2256_s24 }
  0x16   : > { %s1950_s27 = scalar_lea.hbm %s2549_s1, 1024 }
  0x17   : > { %p1951_p12 = scmp.ne.s32.totalorder %s2549_s1, %s1950_s27  ;;  %p2266_p13 = pneg %p2250_p11 }
  0x18   : > { %p1957_p5 = scmp.lt.u32.totalorder %s1950_s27, %s2549_s1 }
  0x19   : > { %p1953_p0 = pnand %p2266_p13, %p1951_p12 }
  0x1b   : > { %p1954_p3 = pneg %p1953_p0 }
  0x1d   : > { %p1959_p7 = pnand %p1957_p5, %p1954_p3 }
  0x1f   : > { %1962 = shalt.err (!%p1959_p7)
}
  0x20   : > { %s1963_s23 = scalar_lea.vmem %s2243_s19, 1024  ;;  %p1971_p2 = scmp.lt.s32.totalorder %s2243_s19, %s2243_s19 }
  0x21   : > { %p1964_p9 = scmp.ne.s32.totalorder %s2243_s19, %s1963_s23  ;;  %p1972_p6 = scmp.lt.s32.totalorder %s1963_s23, %s1963_s23 }
  0x23   : > { %p1966_p10 = pnand %p1964_p9, %p2266_p13  ;;  %p1973_p12 = por %p1972_p6, %p1971_p2 }
  0x25   : > { %p1967_p1 = pneg %p1966_p10 }
  0x27   : > { %p1974_p0 = pnand %p1973_p12, %p1967_p1 }
  0x29   : > { %1977 = shalt.err (!%p1974_p0)
}
  0x2a   : > { %s2143_s25 = smov 128   ;;  %s2144_s26 = smov 8  }
  0x2b   : > { %1888 = dma.hbm_to_vmem [thread:$0]  (!%p2250_p11), %s2549_s1, 1024, %s2243_s19, [#allocation6], %s2143_s25, %s2143_s25, %s2144_s26  }
  0x2c   : > { %s1978_s21 = scalar_lea.hbm %s2551_s3, 6144 }
  0x2d   : > { %p1979_p1 = scmp.ne.s32.totalorder %s2551_s3, %s1978_s21  ;;  %p1985_p10 = scmp.lt.u32.totalorder %s1978_s21, %s2551_s3 }
  0x2f   : > { %p1981_p2 = pnand %p1979_p1, %p2266_p13 }
  0x31   : > { %p1982_p6 = pneg %p1981_p2 }
  0x33   : > { %p1987_p3 = pnand %p1985_p10, %p1982_p6 }
  0x35   : > { %1990 = shalt.err (!%p1987_p3)
}
  0x36   : > { %s1991_s19 = scalar_lea.vmem %s2254_s22, 6144  ;;  %p1999_p12 = scmp.lt.s32.totalorder %s2254_s22, %s2254_s22 }
  0x37   : > { %p1992_p5 = scmp.ne.s32.totalorder %s2254_s22, %s1991_s19  ;;  %p2000_p0 = scmp.lt.s32.totalorder %s1991_s19, %s1991_s19 }
  0x39   : > { %p1994_p7 = pnand %p1992_p5, %p2266_p13  ;;  %p2001_p1 = por %p2000_p0, %p1999_p12 }
  0x3b   : > { %p1995_p9 = pneg %p1994_p7 }
  0x3d   : > { %p2002_p2 = pnand %p2001_p1, %p1995_p9 }
  0x3f   : > { %2005 = shalt.err (!%p2002_p2)
}
  0x40   : > { %1891 = dma.hbm_to_vmem [thread:$0]  (!%p2250_p11), %s2551_s3, 6144, %s2254_s22, [#allocation6], %s2143_s25, %s2143_s25, %s2144_s26  }
  0x41   : > { %s2006_s28 = scalar_lea.hbm %s2554_s6, 6144 }
  0x42   : > { %p2007_p6 = scmp.ne.s32.totalorder %s2554_s6, %s2006_s28  ;;  %p2013_p5 = scmp.lt.u32.totalorder %s2006_s28, %s2554_s6 }
  0x44   : > { %p2009_p10 = pnand %p2007_p6, %p2266_p13 }
  0x46   : > { %p2010_p3 = pneg %p2009_p10 }
  0x48   : > { %p2015_p7 = pnand %p2013_p5, %p2010_p3 }
  0x4a   : > { %2018 = shalt.err (!%p2015_p7)
}
  0x4b   : > { %s2019_s19 = scalar_lea.vmem %s300_s24, 6144  ;;  %p2027_p1 = scmp.lt.s32.totalorder %s300_s24, %s300_s24 }
  0x4c   : > { %p2020_p9 = scmp.ne.s32.totalorder %s300_s24, %s2019_s19  ;;  %p2028_p2 = scmp.lt.s32.totalorder %s2019_s19, %s2019_s19 }
  0x4e   : > { %p2022_p12 = pnand %p2020_p9, %p2266_p13  ;;  %p2029_p4 = por %p2028_p2, %p2027_p1 }
  0x50   : > { %p2023_p0 = pneg %p2022_p12 }
  0x52   : > { %p2030_p8 = pnand %p2029_p4, %p2023_p0 }
  0x54   : > { %2033 = shalt.err (!%p2030_p8)
}
  0x55   : > { %1894 = dma.hbm_to_vmem [thread:$0]  (!%p2250_p11), %s2554_s6, 6144, %s300_s24, [#allocation9], %s2143_s25, %s2143_s25, %s2144_s26  }
  0x56   : > { %s2339_s14 = sadd.s32 1, %s2138_s12   ;;  %s34_s30 = sadd.s32 1, %s2134_s11 }
  0x57   : > { %s31_s20 = ssub.s32 %s2138_s12, %s2339_s14  ;;  %p41_p8 = scmp.ne.s32.totalorder %s2134_s11, %s2130_s10 }
  0x58   : > { %p32_p4 = scmp.eq.s32.totalorder %s31_s20, 0  ;;  %p42_p13 = scmp.eq.s32.totalorder %s2138_s12, 0 }
  0x59   : > { %p1906_p6 = scmp.lt.s32.totalorder %s2138_s12, 2  ;;  %p2572_p3 = scmp.eq.s32.totalorder %s2220_s13, 1 }
  0x5a   : > { %s2349_s16 = scalar_select %p32_p4, %s2134_s11, %s34_s30  }
  0x5b   : > { %p43_p10 = por %p42_p13, %p41_p8  ;;  %p2353_p5 = por %p2572_p3, %p41_p8 }
  0x5c   : > { %s319_s28 = sand.u32 1, %s2134_s11   ;;  %s1302_s29 = sshll.u32 %s2138_s12, 8 }
  0x5d   : > { %s1273_s24 = sshll.u32 %s319_s28, 4  ;;  %s2362_s23 = scalar_lea.hbm %s2548_s0, %s1302_s29 }
  0x5e   : > { %s323_s19 = scalar_lea.vmem [#allocation2], %s1273_s24  ;;  %p2364_p11 = pnand %p1906_p6, %p43_p10 }
  0x5f   : > { %s330_s22 = sshll.u32 %s323_s19, 4  ;;  %s2370_s20 = scalar_lea.sflag [#allocation3], %s319_s28  ;;  %s2368_s22 = int_to_ptr.vmem [resolvable:$true] %s330_s22 }
  0x60   : > { %s2034_s30 = scalar_lea.hbm %s2362_s23, 256  ;;  %p2036_p9 = pneg %p2364_p11 }
  0x61   : > { %p2035_p7 = scmp.ne.s32.totalorder %s2362_s23, %s2034_s30  ;;  %s2039_s18 = scalar_lea.hbm %s2548_s0, 512 }
  0x62   : > { %p2040_p1 = scmp.lt.u32.totalorder %s2362_s23, %s2548_s0  ;;  %p2041_p2 = scmp.lt.u32.totalorder %s2039_s18, %s2034_s30 }
  0x63   : > { %p2037_p12 = pnand %p2036_p9, %p2035_p7  ;;  %p2043_p8 = scmp.lt.u32.totalorder %s2034_s30, %s2362_s23 }
  0x64   : > { %p2042_p4 = por %p2041_p2, %p2040_p1 }
  0x65   : > { %p2038_p0 = pneg %p2037_p12 }
  0x66   : > { %p2044_p13 = por %p2043_p8, %p2042_p4 }
  0x68   : > { %p2045_p6 = pnand %p2044_p13, %p2038_p0 }
  0x6a   : > { %2048 = shalt.err (!%p2045_p6)
}
  0x6b   : > { %s2049_s28 = scalar_lea.vmem %s2368_s22, 256  ;;  %s2145_s29 = smov [#allocation2]  }
  0x6c   : > { %p2050_p10 = scmp.ne.s32.totalorder %s2368_s22, %s2049_s28  ;;  %s2054_s24 = sshll.u32 %s2145_s29, 4  ;;  %s2055_s24 = int_to_ptr.vmem [resolvable:$false] %s2054_s24 }
  0x6d   : > { %s2056_s21 = scalar_lea.vmem %s2055_s24, 512  ;;  %p2057_p12 = scmp.lt.s32.totalorder %s2368_s22, %s2055_s24 }
  0x6e   : > { %p2052_p3 = pnand %p2050_p10, %p2036_p9  ;;  %p2058_p1 = scmp.lt.s32.totalorder %s2056_s21, %s2049_s28 }
  0x70   : > { %p2053_p7 = pneg %p2052_p3  ;;  %p2059_p2 = por %p2058_p1, %p2057_p12 }
  0x72   : > { %p2060_p4 = pnand %p2059_p2, %p2053_p7 }
  0x74   : > { %2063 = shalt.err (!%p2060_p4)
}
  0x75   : > { %1898 = dma.hbm_to_vmem [thread:$0]  (!%p2364_p11), %s2362_s23, 256, %s2368_s22, %s2370_s20, %s2143_s25, %s2143_s25, %s2144_s26  }
  0x76   : > { %p2575_p9 = scmp.ne.s32.totalorder %s2569_s17, 0 }
  0x77   : > { %s2404_s30 = sand.u32 (!%p2575_p9), 1, %s2130_s10   ;;  %p2576_p0 = scmp.ne.s32.totalorder (!%p2575_p9), %s2566_s15, 0 }
  0x78   : > { %342 = sbr.rel (%p2575_p9) target bundleno = 960 (0x3c0), region = 56  ;;  %s1277_s18 = sshll.u32 (!%p2575_p9), %s2404_s30, 4 }
  0x79   : > { %s345_s19 = scalar_lea.sflag (!%p2575_p9), [#allocation3], %s2404_s30  ;;  %s2410_s9 = scalar_lea.vmem (!%p2575_p9), [#allocation2], %s1277_s18 }
  0x7f   : > { %2109 = dma.done.wait (%p2576_p0), %s345_s19, 256  }
  0x80   : > { %2111 = vsyncadd (%p2576_p0), %s345_s19, 4294967040  ;;  %p2577_p11 = scmp.eq.s32.totalorder %s2220_s13, 0 }
  0x82   : > { %2113 = dma.done.wait (%p2577_p11), [#allocation6], 7168   ;;  %p2578_p8 = pmov %p2577_p11 }
  0x84   : > { %2115 = vsyncadd (%p2578_p8), [#allocation6], 4294960128  ;;  %p2579_p13 = pmov %p2578_p8 }
  0x85   : > { %p2580_p6 = pmov %p2578_p8 }
  0x86   : > { %2117 = dma.done.wait (%p2579_p13), [#allocation9], 6144  }
  0x87   : > { %2119 = vsyncadd (%p2580_p6), [#allocation9], 4294961152  ;;  %v430_v0 = vld [vmem:[#allocation5] sm:$0xff]  ;;  %v431_v1 = vld [vmem:[#allocation5 + $0x8] sm:$0xff]  ;;  %vm445_vm0 = vcmask 523264   ;;  %v397_v59 = vlaneseq  ;;  %s394_s21 = scalar_lea.vmem [#allocation10], %s1277_s18 }
  0x88   : > { %v432_v2 = vld [vmem:[#allocation5 + $0x10] sm:$0xff]  ;;  %v1653_v3 = vpack.c.bf16 %v431_v1, %v430_v0  ;;  %v433_v4 = vld [vmem:[#allocation5 + $0x18] sm:$0xff]  ;;  %v434_v6 = vld [vmem:[#allocation5 + $0x20] sm:$0xff]  ;;  %s1165_s19 = sshll.u32 %s394_s21, 4  ;;  %s2585_s25 = sld [smem:[#allocation17_spill]]  ;;  %s2497_s19 = int_to_ptr.vmem [resolvable:$true] %s1165_s19 }
  0x89   : > { %v1657_v5 = vpack.c.bf16 %v433_v4, %v432_v2  ;;  %v435_v7 = vld [vmem:[#allocation5 + $0x28] sm:$0xff]  ;;  %v428_v8 = vld [vmem:[%s2410_s9] sm:$0xff]  ;;  %v561_v13 = vld [vmem:[#allocation7 + $0x18] sm:$0xff]  ;;  %v2428_v60 = vshrl.u32 %v397_v59, 7  ;;  %s1152_s18 = scalar_lea.sflag [#allocation4], %s2404_s30  ;;  %s2146_s23 = smov [#allocation10]  }
  0x8a   : > { %1654 = vmatprep.subr.bf16.mxu0 %v1653_v3  ;;  %1440 = vmatprep.mubr.msk.f32.mxu0 %vm445_vm0, %v428_v8  ;;  %v558_v9 = vld [vmem:[#allocation7] sm:$0xff]  ;;  %v559_v10 = vld [vmem:[#allocation7 + $0x8] sm:$0xff]  ;;  %v560_v12 = vld [vmem:[#allocation7 + $0x10] sm:$0xff]  ;;  %v1661_v14 = vpack.c.bf16 %v435_v7, %v434_v6  ;;  %s2068_s22 = sshll.u32 %s2146_s23, 4  ;;  %s2069_s22 = int_to_ptr.vmem [resolvable:$false] %s2068_s22 }
  0x8b   : > { %1656 = vmatpush3.bf16.msra.mxu0 %v1653_v3  ;;  %v1669_v11 = vpack.c.bf16 %v559_v10, %v558_v9  ;;  %v1673_v15 = vpack.c.bf16 %v561_v13, %v560_v12  ;;  %v562_v16 = vld [vmem:[#allocation7 + $0x20] sm:$0xff]  ;;  %v563_v17 = vld [vmem:[#allocation7 + $0x28] sm:$0xff]  ;;  %v436_v18 = vld [vmem:[#allocation5 + $0x30] sm:$0xff]  ;;  %v404_v63 = vand.u32 15, %v2428_v60  ;;  %vm546_vm1 = vcmp.lt.s32.totalorder %v2428_v60, 1  ;;  %s2070_s20 = scalar_lea.vmem %s2069_s22, 512  ;;  %p2071_p12 = scmp.lt.s32.totalorder %s2497_s19, %s2069_s22 }
  0x8c   : > { %1658 = vmatprep.subr.bf16.mxu0 %v1657_v5  ;;  %v437_v19 = vld [vmem:[#allocation5 + $0x38] sm:$0xff]  ;;  %v1677_v20 = vpack.c.bf16 %v563_v17, %v562_v16  ;;  %v564_v22 = vld [vmem:[#allocation7 + $0x30] sm:$0xff]  ;;  %v566_v25 = vld [vmem:[#allocation7 + $0x40] sm:$0xff]  ;;  %vm553_vm3 = vcmp.lt.s32.totalorder %v2428_v60, 7 }
  0x8d   : > { %1670 = vmatprep.subr.bf16.mxu1 %v1669_v11  ;;  %v1665_v21 = vpack.c.bf16 %v437_v19, %v436_v18  ;;  %v565_v23 = vld [vmem:[#allocation7 + $0x38] sm:$0xff]  ;;  %v567_v26 = vld [vmem:[#allocation7 + $0x48] sm:$0xff]  ;;  %v568_v29 = vld [vmem:[#allocation7 + $0x50] sm:$0xff]  ;;  %vm2441_vm2 = vcmp.ne.s32.totalorder %v404_v63, 0 }
  0x8e   : > { %1672 = vmatpush3.bf16.msra.mxu1 %v1669_v11  ;;  %v1681_v24 = vpack.c.bf16 %v565_v23, %v564_v22  ;;  %v429_v27 = vld [vmem:[%s2410_s9 + $0x8] sm:$0xff]  ;;  %v1685_v28 = vpack.c.bf16 %v567_v26, %v566_v25  ;;  %v570_v32 = vld [vmem:[#allocation7 + $0x60] sm:$0xff]  ;;  %v572_v35 = vld [vmem:[#allocation7 + $0x70] sm:$0xff]  ;;  %s1303_s9 = sshll.u32 %s2220_s13, 8  ;;  %s2064_s13 = scalar_lea.vmem %s2497_s19, 256 }
  0x8f   : > { %1660 = vmatpush3.bf16.msra.mxu0 %v1657_v5  ;;  %1674 = vmatprep.subr.bf16.mxu1 %v1673_v15  ;;  %v569_v30 = vld [vmem:[#allocation7 + $0x58] sm:$0xff]  ;;  %v571_v33 = vld [vmem:[#allocation7 + $0x68] sm:$0xff]  ;;  %v528_v38 = vld [vmem:[#allocation7 + $0x80] sm:$0xff]  ;;  %s2503_s26 = scalar_lea.hbm %s2585_s25, %s1303_s9  ;;  %p2065_p10 = scmp.ne.s32.totalorder %s2497_s19, %s2064_s13 }
  0x90   : > { %1662 = vmatprep.subr.bf16.mxu0 %v1661_v14  ;;  %v1689_v31 = vpack.c.bf16 %v569_v30, %v568_v29  ;;  %v1693_v34 = vpack.c.bf16 %v571_v33, %v570_v32  ;;  %v573_v36 = vld [vmem:[#allocation7 + $0x78] sm:$0xff]  ;;  %v529_v39 = vld [vmem:[#allocation7 + $0x88] sm:$0xff]  ;;  %v867_v41 = vld [vmem:[#allocation8] sm:$0xff]  ;;  %p2072_p1 = scmp.lt.s32.totalorder %s2070_s20, %s2064_s13 }
  0x91   : > { %v1697_v37 = vpack.c.bf16 %v573_v36, %v572_v35  ;;  %v1701_v40 = vpack.c.bf16 %v529_v39, %v528_v38  ;;  %v868_v42 = vld [vmem:[#allocation8 + $0x8] sm:$0xff]  ;;  %v869_v43 = vld [vmem:[#allocation8 + $0x10] sm:$0xff]  ;;  %v870_v45 = vld [vmem:[#allocation8 + $0x18] sm:$0xff]  ;;  %p2066_p3 = pnand %p2065_p10, %p2353_p5 }
  0x92   : > { %1676 = vmatpush3.bf16.msra.mxu1 %v1673_v15  ;;  %v1765_v44 = vpack.c.bf16 %v868_v42, %v867_v41  ;;  %v1769_v46 = vpack.c.bf16 %v870_v45, %v869_v43  ;;  %v871_v47 = vld [vmem:[#allocation8 + $0x20] sm:$0xff]  ;;  %v872_v48 = vld [vmem:[#allocation8 + $0x28] sm:$0xff]  ;;  %v873_v50 = vld [vmem:[#allocation8 + $0x30] sm:$0xff]  ;;  %p2073_p2 = por %p2072_p1, %p2071_p12 }
  0x93   : > { %1664 = vmatpush3.bf16.msra.mxu0 %v1661_v14  ;;  %1678 = vmatprep.subr.bf16.mxu1 %v1677_v20  ;;  %v1773_v49 = vpack.c.bf16 %v872_v48, %v871_v47  ;;  %v874_v51 = vld [vmem:[#allocation8 + $0x38] sm:$0xff]  ;;  %v875_v53 = vld [vmem:[#allocation8 + $0x40] sm:$0xff]  ;;  %v876_v54 = vld [vmem:[#allocation8 + $0x48] sm:$0xff]  ;;  %p2067_p7 = pneg %p2066_p3 }
  0x94   : > { %1666 = vmatprep.subr.bf16.mxu0 %v1665_v21  ;;  %v1777_v52 = vpack.c.bf16 %v874_v51, %v873_v50  ;;  %v1781_v55 = vpack.c.bf16 %v876_v54, %v875_v53  ;;  %v877_v56 = vld [vmem:[#allocation8 + $0x50] sm:$0xff]  ;;  %v878_v57 = vld [vmem:[#allocation8 + $0x58] sm:$0xff]  ;;  %v1282_v61 = vld [vmem:[%s2550_s2] ss:$0 sm:$0xff] }
  0x95   : > { %v1785_v58 = vpack.c.bf16 %v878_v57, %v877_v56  ;;  %v530_v4 = vld [vmem:[#allocation7 + $0x90] sm:$0xff]  ;;  %v531_v5 = vld [vmem:[#allocation7 + $0x98] sm:$0xff]  ;;  %v532_v11 = vld [vmem:[#allocation7 + $0xa0] sm:$0xff]  ;;  %p2074_p4 = pnand %p2073_p2, %p2067_p7 }
  0x96   : > { %1680 = vmatpush3.bf16.msra.mxu1 %v1677_v20  ;;  %v1705_v10 = vpack.c.bf16 %v531_v5, %v530_v4  ;;  %v533_v12 = vld [vmem:[#allocation7 + $0xa8] sm:$0xff]  ;;  %v534_v14 = vld [vmem:[#allocation7 + $0xb0] sm:$0xff]  ;;  %v535_v15 = vld [vmem:[#allocation7 + $0xb8] sm:$0xff] }
  0x97   : > { %1668 = vmatpush3.bf16.msra.mxu0 %v1665_v21  ;;  %1682 = vmatprep.subr.bf16.mxu1 %v1681_v24  ;;  %v1709_v13 = vpack.c.bf16 %v533_v12, %v532_v11  ;;  %v1713_v16 = vpack.c.bf16 %v535_v15, %v534_v14  ;;  %v536_v17 = vld [vmem:[#allocation7 + $0xc0] sm:$0xff]  ;;  %v537_v18 = vld [vmem:[#allocation7 + $0xc8] sm:$0xff]  ;;  %v538_v20 = vld [vmem:[#allocation7 + $0xd0] sm:$0xff] }
  0x98   : > { %1766 = vmatprep.subr.bf16.mxu0 %v1765_v44  ;;  %v1717_v19 = vpack.c.bf16 %v537_v18, %v536_v17  ;;  %v539_v21 = vld [vmem:[#allocation7 + $0xd8] sm:$0xff]  ;;  %v540_v23 = vld [vmem:[#allocation7 + $0xe0] sm:$0xff]  ;;  %v542_v26 = vld [vmem:[#allocation7 + $0xf0] sm:$0xff] }
  0x99   : > { %v1721_v22 = vpack.c.bf16 %v539_v21, %v538_v20  ;;  %v725_v29 = vld [vmem:[#allocation7 + $0x100] sm:$0xff]  ;;  %v726_v30 = vld [vmem:[#allocation7 + $0x108] sm:$0xff]  ;;  %v727_v32 = vld [vmem:[#allocation7 + $0x110] sm:$0xff] }
  0x9a   : > { %1441 = vmatmul.mubr.msk.f32.vlgmr.msra.gmra.mrb[0].mxu0 %vm445_vm0, %v429_v27  ;;  %1684 = vmatpush3.bf16.msra.mxu1 %v1681_v24  ;;  %v541_v24 = vld [vmem:[#allocation7 + $0xe8] sm:$0xff]  ;;  %v543_v27 = vld [vmem:[#allocation7 + $0xf8] sm:$0xff]  ;;  %v731_v41 = vld [vmem:[#allocation7 + $0x130] sm:$0xff] }
  0x9b   : > { %1686 = vmatprep.subr.bf16.mxu1 %v1685_v28  ;;  %1768 = vmatpush3.bf16.msra.mxu0 %v1765_v44  ;;  %v1725_v25 = vpack.c.bf16 %v541_v24, %v540_v23  ;;  %v728_v33 = vld [vmem:[#allocation7 + $0x118] sm:$0xff]  ;;  %v730_v38 = vld [vmem:[#allocation7 + $0x128] sm:$0xff]  ;;  %v733_v44 = vld [vmem:[#allocation7 + $0x140] sm:$0xff] }
  0x9c   : > { %1770 = vmatprep.subr.bf16.mxu0 %v1769_v46  ;;  %v1737_v36 = vpack.c.bf16 %v728_v33, %v727_v32  ;;  %v732_v42 = vld [vmem:[#allocation7 + $0x138] sm:$0xff]  ;;  %v734_v45 = vld [vmem:[#allocation7 + $0x148] sm:$0xff]  ;;  %v735_v47 = vld [vmem:[#allocation7 + $0x150] sm:$0xff] }
  0x9d   : > { %v1745_v43 = vpack.c.bf16 %v732_v42, %v731_v41  ;;  %v736_v48 = vld [vmem:[#allocation7 + $0x158] sm:$0xff]  ;;  %v737_v50 = vld [vmem:[#allocation7 + $0x160] sm:$0xff]  ;;  %v738_v51 = vld [vmem:[#allocation7 + $0x168] sm:$0xff] }
  0x9e   : > { %1688 = vmatpush3.bf16.msra.mxu1 %v1685_v28  ;;  %v1729_v28 = vpack.c.bf16 %v543_v27, %v542_v26  ;;  %v739_v53 = vld [vmem:[#allocation7 + $0x170] sm:$0xff]  ;;  %v740_v54 = vld [vmem:[#allocation7 + $0x178] sm:$0xff]  ;;  %v839_v5 = vld [vmem:[#allocation8 + $0x80] sm:$0xff] }
  0x9f   : > { %1690 = vmatprep.subr.bf16.mxu1 %v1689_v31  ;;  %1772 = vmatpush3.bf16.msra.mxu0 %v1769_v46  ;;  %v1749_v46 = vpack.c.bf16 %v734_v45, %v733_v44  ;;  %v1761_v56 = vpack.c.bf16 %v740_v54, %v739_v53  ;;  %v1290_v11 = vld [vmem:[%s2553_s5] ss:$0 sm:$0xff]  ;;  %v842_v20 = vld [vmem:[#allocation8 + $0x98] sm:$0xff]  ;;  %v845_v33 = vld [vmem:[#allocation8 + $0xb0] sm:$0xff] }
  0xa0   : > { %1774 = vmatprep.subr.bf16.mxu0 %v1773_v49  ;;  %v850_v7 = vld [vmem:[#allocation8 + $0xd8] sm:$0xff]  ;;  %v852_v41 = vld [vmem:[#allocation8 + $0xe8] sm:$0xff] }
  0xa1   : > { %v854_v44 = vld [vmem:[#allocation8 + $0xf8] sm:$0xff]  ;;  %v1039_v53 = vld [vmem:[#allocation8 + $0x128] sm:$0xff] }
  0xa2   : > { %1692 = vmatpush3.bf16.msra.mxu1 %v1689_v31  ;;  %v1733_v31 = vpack.c.bf16 %v726_v30, %v725_v29  ;;  %v843_v30 = vld [vmem:[#allocation8 + $0xa0] sm:$0xff] }
  0xa3   : > { %1694 = vmatprep.subr.bf16.mxu1 %v1693_v34  ;;  %1776 = vmatpush3.bf16.msra.mxu0 %v1773_v49  ;;  %v1753_v49 = vpack.c.bf16 %v736_v48, %v735_v47  ;;  %v1035_v47 = vld [vmem:[#allocation8 + $0x108] sm:$0xff] }
  0xa4   : > { %1778 = vmatprep.subr.bf16.mxu0 %v1777_v52 }
  0xa6   : > { %1696 = vmatpush3.bf16.msra.mxu1 %v1693_v34 }
  0xa7   : > { %1698 = vmatprep.subr.bf16.mxu1 %v1697_v37  ;;  %1780 = vmatpush3.bf16.msra.mxu0 %v1777_v52  ;;  %v1757_v52 = vpack.c.bf16 %v738_v51, %v737_v50  ;;  %v1037_v50 = vld [vmem:[#allocation8 + $0x118] sm:$0xff] }
  0xa8   : > { %1782 = vmatprep.subr.bf16.mxu0 %v1781_v55 }
  0xaa   : > { %1700 = vmatpush3.bf16.msra.mxu1 %v1697_v37  ;;  %v729_v37 = vld [vmem:[#allocation7 + $0x120] sm:$0xff] }
  0xab   : > { %1702 = vmatprep.subr.bf16.mxu1 %v1701_v40  ;;  %1784 = vmatpush3.bf16.msra.mxu0 %v1781_v55  ;;  %v399_v55 = vadd.s32 8, %v2428_v60 }
  0xac   : > { %1786 = vmatprep.subr.bf16.mxu0 %v1785_v58 }
  0xad   : > { %v411_v57 = vand.u32 15, %v399_v55  ;;  %v1040_v55 = vld [vmem:[#allocation8 + $0x130] sm:$0xff] }
  0xaf   : > { %1788 = vmatpush3.bf16.msra.mxu0 %v1785_v58  ;;  %vm2459_vm4 = vcmp.ne.s32.totalorder %v411_v57, 15 }
 0x16d   : > { %v1442_v62 = vpop.f32.mrb[0].mxu0 }
 0x16e   : > { %v2434_v0 = vadd.f32 %v1442_v62, %v1282_v61  ;;  %v518_v1 = vpop.f32.mrb[1].mxu0  ;;  %v880_v62 = vld [vmem:[#allocation8 + $0x68] sm:$0xff] }
 0x16f   : > { %v2436_v2 = vadd.f32 %v1282_v61, %v518_v1  ;;  %v879_v61 = vld [vmem:[#allocation8 + $0x60] sm:$0xff]  ;;  %v881_v1 = vld [vmem:[#allocation8 + $0x70] sm:$0xff] }
 0x170   : > { %v545_v3 = vrot.slane %v2434_v0, 7  ;;  %v552_v35 = vrot.slane %v2434_v0, 1  ;;  %v1789_v63 = vpack.c.bf16 %v880_v62, %v879_v61  ;;  %v1043_v61 = vld [vmem:[#allocation8 + $0x148] sm:$0xff] }
 0x171   : > { %v544_v6 = vrot.slane %v2436_v2, 7  ;;  %v551_v34 = vrot.slane %v2436_v2, 1 }
 0x172   : > { %1790 = vmatprep.subr.bf16.mxu0 %v1789_v63 }
 0x173   : > { %v548_v8 = vsel %vm546_vm1, %v545_v3, %v544_v6  ;;  %v547_v9 = vsel %vm546_vm1, %v544_v6, %v545_v3  ;;  %v554_v39 = vsel %vm553_vm3, %v551_v34, %v552_v35  ;;  %v555_v59 = vsel %vm553_vm3, %v552_v35, %v551_v34  ;;  %1792 = vmatpush3.bf16.msra.mxu0 %v1789_v63  ;;  %v882_v3 = vld [vmem:[#allocation8 + $0x78] sm:$0xff]  ;;  %v840_v6 = vld [vmem:[#allocation8 + $0x88] sm:$0xff]  ;;  %v1044_v63 = vld [vmem:[#allocation8 + $0x150] sm:$0xff] }
 0x174   : > { %1475 = vmatprep.mubr.msk.f32.mxu1 %vm2441_vm2, %v548_v8  ;;  %v1793_v4 = vpack.c.bf16 %v882_v3, %v881_v1  ;;  %v1797_v8 = vpack.c.bf16 %v840_v6, %v839_v5  ;;  %v846_v34 = vld [vmem:[#allocation8 + $0xb8] sm:$0xff]  ;;  %v1047_v5 = vld [vmem:[#allocation8 + $0x168] sm:$0xff] }
 0x175   : > { %1476 = vmatmul.mubr.f32.vlgmr.msra.gmra.mrb[0].mxu1 %v547_v9  ;;  %v1289_v9 = vld [vmem:[%s2552_s4] ss:$0 sm:$0xff]  ;;  %v1809_v35 = vpack.c.bf16 %v846_v34, %v845_v33  ;;  %v1045_v1 = vld [vmem:[#allocation8 + $0x158] sm:$0xff] }
 0x176   : > { %1704 = vmatpush3.bf16.msra.mxu1 %v1701_v40  ;;  %1510 = vmatprep.mubr.f32.mxu1 %v2436_v2  ;;  %v1741_v40 = vpack.c.bf16 %v730_v38, %v729_v37  ;;  %v848_v37 = vld [vmem:[#allocation8 + $0xc8] sm:$0xff]  ;;  %v849_v38 = vld [vmem:[#allocation8 + $0xd0] sm:$0xff]  ;;  %v1849_v3 = vpack.c.bf16 %v1045_v1, %v1044_v63 }
 0x177   : > { %1706 = vmatprep.subr.bf16.mxu1 %v1705_v10  ;;  %1794 = vmatprep.subr.bf16.mxu0 %v1793_v4 }
 0x178   : > { %1796 = vmatpush3.bf16.msra.mxu0 %v1793_v4  ;;  %v1046_v4 = vld [vmem:[#allocation8 + $0x160] sm:$0xff] }
 0x179   : > { %1798 = vmatprep.subr.bf16.mxu0 %v1797_v8  ;;  %v1853_v6 = vpack.c.bf16 %v1047_v5, %v1046_v4 }
 0x17a   : > { %1708 = vmatpush3.bf16.msra.mxu1 %v1705_v10 }
 0x17b   : > { %1710 = vmatprep.subr.bf16.mxu1 %v1709_v13 }
 0x17e   : > { %1712 = vmatpush3.bf16.msra.mxu1 %v1709_v13 }
 0x17f   : > { %1714 = vmatprep.subr.bf16.mxu1 %v1713_v16 }
 0x182   : > { %1716 = vmatpush3.bf16.msra.mxu1 %v1713_v16 }
 0x183   : > { %1718 = vmatprep.subr.bf16.mxu1 %v1717_v19 }
 0x186   : > { %1720 = vmatpush3.bf16.msra.mxu1 %v1717_v19  ;;  %v841_v19 = vld [vmem:[#allocation8 + $0x90] sm:$0xff] }
 0x187   : > { %1722 = vmatprep.subr.bf16.mxu1 %v1721_v22 }
 0x18a   : > { %1724 = vmatpush3.bf16.msra.mxu1 %v1721_v22 }
 0x18b   : > { %1726 = vmatprep.subr.bf16.mxu1 %v1725_v25 }
 0x18e   : > { %1728 = vmatpush3.bf16.msra.mxu1 %v1725_v25  ;;  %v1801_v25 = vpack.c.bf16 %v842_v20, %v841_v19 }
 0x18f   : > { %1730 = vmatprep.subr.bf16.mxu1 %v1729_v28 }
 0x192   : > { %1732 = vmatpush3.bf16.msra.mxu1 %v1729_v28 }
 0x193   : > { %1734 = vmatprep.subr.bf16.mxu1 %v1733_v31 }
 0x195   : > { %1511 = vmatmul.mubr.f32.vlgmr.msra.gmra.mrb[0].mxu1 %v2434_v0 }
 0x196   : > { %1736 = vmatpush3.bf16.msra.mxu1 %v1733_v31  ;;  %1545 = vmatprep.mubr.f32.mxu1 %v554_v39  ;;  %v844_v31 = vld [vmem:[#allocation8 + $0xa8] sm:$0xff]  ;;  %v1817_v39 = vpack.c.bf16 %v850_v7, %v849_v38 }
 0x197   : > { %1738 = vmatprep.subr.bf16.mxu1 %v1737_v36  ;;  %v1805_v32 = vpack.c.bf16 %v844_v31, %v843_v30 }
 0x19a   : > { %1740 = vmatpush3.bf16.msra.mxu1 %v1737_v36  ;;  %v847_v36 = vld [vmem:[#allocation8 + $0xc0] sm:$0xff] }
 0x19b   : > { %1742 = vmatprep.subr.bf16.mxu1 %v1741_v40  ;;  %v1813_v60 = vpack.c.bf16 %v848_v37, %v847_v36 }
 0x19e   : > { %1744 = vmatpush3.bf16.msra.mxu1 %v1741_v40  ;;  %v851_v40 = vld [vmem:[#allocation8 + $0xe0] sm:$0xff] }
 0x19f   : > { %1746 = vmatprep.subr.bf16.mxu1 %v1745_v43  ;;  %v1821_v42 = vpack.c.bf16 %v852_v41, %v851_v40 }
 0x1a2   : > { %1748 = vmatpush3.bf16.msra.mxu1 %v1745_v43  ;;  %v853_v43 = vld [vmem:[#allocation8 + $0xf0] sm:$0xff] }
 0x1a3   : > { %1750 = vmatprep.subr.bf16.mxu1 %v1749_v46  ;;  %v1825_v45 = vpack.c.bf16 %v854_v44, %v853_v43 }
 0x1a6   : > { %1752 = vmatpush3.bf16.msra.mxu1 %v1749_v46  ;;  %v1034_v46 = vld [vmem:[#allocation8 + $0x100] sm:$0xff] }
 0x1a7   : > { %1754 = vmatprep.subr.bf16.mxu1 %v1753_v49  ;;  %v1829_v48 = vpack.c.bf16 %v1035_v47, %v1034_v46 }
 0x1aa   : > { %1756 = vmatpush3.bf16.msra.mxu1 %v1753_v49  ;;  %v1036_v49 = vld [vmem:[#allocation8 + $0x110] sm:$0xff] }
 0x1ab   : > { %1758 = vmatprep.subr.bf16.mxu1 %v1757_v52  ;;  %v1833_v51 = vpack.c.bf16 %v1037_v50, %v1036_v49 }
 0x1ae   : > { %1760 = vmatpush3.bf16.msra.mxu1 %v1757_v52  ;;  %v1038_v52 = vld [vmem:[#allocation8 + $0x120] sm:$0xff] }
 0x1af   : > { %1762 = vmatprep.subr.bf16.mxu1 %v1761_v56  ;;  %v1837_v54 = vpack.c.bf16 %v1039_v53, %v1038_v52 }
 0x1b2   : > { %1764 = vmatpush3.bf16.msra.mxu1 %v1761_v56  ;;  %v1041_v56 = vld [vmem:[#allocation8 + $0x138] sm:$0xff] }
 0x1b3   : > { %v1841_v57 = vpack.c.bf16 %v1041_v56, %v1040_v55 }
 0x1b5   : > { %1546 = vmatmul.mubr.msk.f32.vlgmr.msra.gmra.mrb[0].mxu1 %vm2459_vm4, %v555_v59  ;;  %v1042_v59 = vld [vmem:[#allocation8 + $0x140] sm:$0xff] }
 0x1b6   : > { %v1845_v62 = vpack.c.bf16 %v1043_v61, %v1042_v59 }
 0x288   : > { %v1547_v10 = vpop.f32.mrb[0].mxu1 }
 0x289   : > { %v826_v12 = vmul.f32 %v1547_v10, %v1289_v9  ;;  %v807_v13 = vpop.f32.mrb[1].mxu1 }
 0x28a   : > { %v825_v14 = vmul.f32 %v1289_v9, %v807_v13  ;;  %v1049_v9 = vld [vmem:[#allocation8 + $0x178] sm:$0xff]  ;;  %v1296_v13 = vld [vmem:[%s2556_s8] ss:$0 sm:$0xff] }
 0x28b   : > { %v835_v15 = vadd.f32 %v1290_v11, %v826_v12 }
 0x28c   : > { %v834_v16 = vadd.f32 %v1290_v11, %v825_v14  ;;  %v1295_v11 = vld [vmem:[%s2555_s7] ss:$0 sm:$0xff] }
 0x28d   : > { %v837_v17 = vmax.f32 %v835_v15, 0.0 }
 0x28e   : > { %v836_v18 = vmax.f32 %v834_v16, 0.0 }
 0x28f   : > { %v856_v21 = vrot.slane %v837_v17, 7  ;;  %v862_v22 = vrot.slane %v837_v17, 1 }
 0x290   : > { %v855_v23 = vrot.slane %v836_v18, 7  ;;  %v861_v24 = vrot.slane %v836_v18, 1 }
 0x292   : > { %v858_v26 = vsel %vm546_vm1, %v856_v21, %v855_v23  ;;  %v857_v27 = vsel %vm546_vm1, %v855_v23, %v856_v21  ;;  %v863_v28 = vsel %vm553_vm3, %v861_v24, %v862_v22  ;;  %v2481_v29 = vsel %vm553_vm3, %v862_v22, %v861_v24 }
 0x293   : > { %1580 = vmatprep.mubr.msk.f32.mxu0 %vm2441_vm2, %v858_v26 }
 0x294   : > { %1581 = vmatmul.mubr.f32.vlgmr.msra.gmra.mrb[2].mxu0 %v857_v27 }
 0x295   : > { %1800 = vmatpush3.bf16.msra.mxu0 %v1797_v8  ;;  %1615 = vmatprep.mubr.f32.mxu0 %v836_v18  ;;  %v1048_v8 = vld [vmem:[#allocation8 + $0x170] sm:$0xff] }
 0x296   : > { %1802 = vmatprep.subr.bf16.mxu0 %v1801_v25  ;;  %v1857_v10 = vpack.c.bf16 %v1049_v9, %v1048_v8 }
 0x299   : > { %1804 = vmatpush3.bf16.msra.mxu0 %v1801_v25 }
 0x29a   : > { %1806 = vmatprep.subr.bf16.mxu0 %v1805_v32 }
 0x29d   : > { %1808 = vmatpush3.bf16.msra.mxu0 %v1805_v32 }
 0x29e   : > { %1810 = vmatprep.subr.bf16.mxu0 %v1809_v35 }
 0x2a1   : > { %1812 = vmatpush3.bf16.msra.mxu0 %v1809_v35 }
 0x2a2   : > { %1814 = vmatprep.subr.bf16.mxu0 %v1813_v60 }
 0x2a5   : > { %1816 = vmatpush3.bf16.msra.mxu0 %v1813_v60 }
 0x2a6   : > { %1818 = vmatprep.subr.bf16.mxu0 %v1817_v39 }
 0x2a9   : > { %1820 = vmatpush3.bf16.msra.mxu0 %v1817_v39 }
 0x2aa   : > { %1822 = vmatprep.subr.bf16.mxu0 %v1821_v42 }
 0x2ad   : > { %1824 = vmatpush3.bf16.msra.mxu0 %v1821_v42 }
 0x2ae   : > { %1826 = vmatprep.subr.bf16.mxu0 %v1825_v45 }
 0x2b1   : > { %1828 = vmatpush3.bf16.msra.mxu0 %v1825_v45 }
 0x2b2   : > { %1830 = vmatprep.subr.bf16.mxu0 %v1829_v48 }
 0x2b4   : > { %1616 = vmatmul.mubr.f32.vlgmr.msra.gmra.mrb[2].mxu0 %v837_v17 }
 0x2b5   : > { %1832 = vmatpush3.bf16.msra.mxu0 %v1829_v48  ;;  %1650 = vmatprep.mubr.f32.mxu0 %v863_v28 }
 0x2b6   : > { %1834 = vmatprep.subr.bf16.mxu0 %v1833_v51 }
 0x2b9   : > { %1836 = vmatpush3.bf16.msra.mxu0 %v1833_v51 }
 0x2ba   : > { %1838 = vmatprep.subr.bf16.mxu0 %v1837_v54 }
 0x2bd   : > { %1840 = vmatpush3.bf16.msra.mxu0 %v1837_v54 }
 0x2be   : > { %1842 = vmatprep.subr.bf16.mxu0 %v1841_v57 }
 0x2c1   : > { %1844 = vmatpush3.bf16.msra.mxu0 %v1841_v57 }
 0x2c2   : > { %1846 = vmatprep.subr.bf16.mxu0 %v1845_v62 }
 0x2c5   : > { %1848 = vmatpush3.bf16.msra.mxu0 %v1845_v62 }
 0x2c6   : > { %1850 = vmatprep.subr.bf16.mxu0 %v1849_v3 }
 0x2c9   : > { %1852 = vmatpush3.bf16.msra.mxu0 %v1849_v3 }
 0x2ca   : > { %1854 = vmatprep.subr.bf16.mxu0 %v1853_v6 }
 0x2cd   : > { %1856 = vmatpush3.bf16.msra.mxu0 %v1853_v6 }
 0x2ce   : > { %1858 = vmatprep.subr.bf16.mxu0 %v1857_v10 }
 0x2d1   : > { %1860 = vmatpush3.bf16.msra.mxu0 %v1857_v10 }
 0x2d4   : > { %1651 = vmatmul.mubr.msk.f32.vlgmr.msra.gmra.mrb[2].mxu0 %vm2459_vm4, %v2481_v29 }
 0x3a7   : > { %v1652_v12 = vpop.f32.mrb[2].mxu0 }
 0x3a8   : > { %v1135_v14 = vmul.f32 %v1652_v12, %v1295_v11  ;;  %v1116_v15 = vpop.f32.mrb[3].mxu0 }
 0x3a9   : > { %v1134_v16 = vmul.f32 %v1295_v11, %v1116_v15 }
 0x3aa   : > { %v1144_v17 = vadd.f32 %v1296_v13, %v1135_v14 }
 0x3ab   : > { %v1143_v58 = vadd.f32 %v1296_v13, %v1134_v16 }
 0x3ac   : > { %v1146_v18 = vmax.f32 %v1144_v17, 0.0 }
 0x3ad   : > { %v1145_v19 = vmax.f32 %v1143_v58, 0.0 }
 0x3ae   : > { %v1148_v20 = vadd.f32 %v1146_v18, %v2434_v0 }
 0x3af   : > { %v1147_v21 = vadd.f32 %v1145_v19, %v2436_v2 }
 0x3b0   : > { %1150 = vst [vmem:[%s394_s21 + $0x8] sm:$0xff] %v1148_v20 }
 0x3b1   : > { %1149 = vst [vmem:[%s394_s21] sm:$0xff] %v1147_v21 }
 0x3b2   : > { %2077 = shalt.err (!%p2074_p4)
}
 0x3b3   : > { %s2078_s28 = scalar_lea.hbm %s2503_s26, 256  ;;  %s2082_s21 = scalar_lea.hbm %s2585_s25, 512 }
 0x3b4   : > { %p2079_p9 = scmp.ne.s32.totalorder %s2503_s26, %s2078_s28  ;;  %p2083_p8 = scmp.lt.u32.totalorder %s2503_s26, %s2585_s25 }
 0x3b5   : > { %p2084_p13 = scmp.lt.u32.totalorder %s2082_s21, %s2078_s28  ;;  %p2086_p10 = scmp.lt.u32.totalorder %s2078_s28, %s2503_s26 }
 0x3b6   : > { %p2080_p0 = pnand %p2079_p9, %p2353_p5 }
 0x3b7   : > { %p2085_p6 = por %p2084_p13, %p2083_p8 }
 0x3b8   : > { %p2081_p11 = pneg %p2080_p0 }
 0x3b9   : > { %p2087_p3 = por %p2086_p10, %p2085_p6 }
 0x3bb   : > { %p2088_p7 = pnand %p2087_p3, %p2081_p11 }
 0x3bd   : > { %2091 = shalt.err (!%p2088_p7)
}
 0x3be   : > { %s2147_s17 = smov 128   ;;  %s2148_s13 = smov 8  }
 0x3bf   : > { %1883 = dma.vmem_to_hbm [thread:$0]  (%p2353_p5), %s2497_s19, 256, %s2503_s26, %s1152_s18, %s2147_s17, %s2147_s17, %s2148_s13  }
 0x3c0 PF: > { %s2586_s23 = sld [smem:[#allocation15_spill]]  ;;  %s2587_s22 = sld [smem:[#allocation16_spill]] }
 0x3c1   : > { %p2589_p1 = scmp.ge.s32.totalorder %s2138_s12, 2 }
 0x3c6   : > { %s1180_s20 = sand.u32 1, %s2586_s23   ;;  %p2588_p12 = scmp.ne.s32.totalorder %s2587_s22, 0 }
 0x3c7   : > { %s1181_s28 = scalar_lea.sflag [#allocation4], %s1180_s20 }
 0x3c8   : > { %p1900_p2 = pnand %p2589_p1, %p2588_p12 }
 0x3ca   : > { %2121 = dma.done.wait (!%p1900_p2), %s1181_s28, 256  }
 0x3cb   : > { %2123 = vsyncadd (!%p1900_p2), %s1181_s28, 4294967040  ;;  %p24_p4 = scmp.ge.s32.totalorder %s2339_s14, 4   ;;  %s2590_s30 = smov %s2130_s10 }
 0x3cc   : > { %s2591_s10 = smov %s2134_s11  ;;  %s2592_s11 = smov %s2349_s16 }
 0x3cd   : > { %s2593_s12 = smov %s2339_s14  ;;  %26 = sbr.rel (!%p24_p4) target bundleno = 9 (0x9), region = 117 }
 0x3d4   :  { %1186 = vsyncpa [#allocation3], 1 }
 0x3d5   :  { %1188 = vsyncpa [#allocation3 + $0x1], 1 }
 0x3d6   :  { %1189 = vsyncpa [#allocation6], 1 }
 0x3d7   :  { %1190 = vsyncpa [#allocation9], 1 }
 0x3d8   :  { %1191 = vsyncpa [#allocation4], 1 }
 0x3d9   :  { %1193 = vsyncpa [#allocation4 + $0x1], 1 }

</bundles_post_ra>
